<compile_context>
chip_gen: v7x
topology: tpu7x:2x2x1
jax: 0.10.0
libtpu: 0.0.40
codegen_flags: <defaults>
</compile_context>

<pallas_src>
import jax
import jax.numpy as jnp
from jax import lax
from jax.experimental import pallas as pl
from jax.experimental.pallas import tpu as pltpu

# ---- model config (from the PyTorch module) ---------------------------------
INPUT_SIZE = 5     # config['lstm'][0]
HIDDEN = 15        # config['lstm'][1]
NUM_LAYERS = 1     # config['lstm'][2]
LIN_IN, LIN_OUT = 15, 7   # config['linear1']


def _lstm_linear_kernel(x_ref, w_ih_t_ref, w_hh_t_ref, b_ref,
                        w_lin_t_ref, b_lin_ref, out_ref):
    """Single-layer LSTM over the full sequence + Linear on final hidden state.

    Everything lives in VMEM (no grid). Gate order follows PyTorch: [i, f, g, o].
    """
    S, B, _I = x_ref.shape
    H = HIDDEN

    # Input contribution for every timestep in one MXU call, no in-kernel
    # reshapes: (S, B, I) . (I, 4H) -> (S, B, 4H). Fused bias added once.
    gx = lax.dot_general(
        x_ref[...], w_ih_t_ref[...],
        dimension_numbers=(((2,), (0,)), ((), ())),
        preferred_element_type=jnp.float32)
    gx = gx + b_ref[...]                       # (1, 4H) broadcast, off the chain

    w_hh_t = w_hh_t_ref[...]                   # (H, 4H)

    h = jnp.zeros((B, H), jnp.float32)
    c = jnp.zeros((B, H), jnp.float32)

    # S is a static trace-time constant (8): fully unroll the serial chain.
    for t in range(S):
        g_t = gx[t] + jnp.dot(h, w_hh_t, preferred_element_type=jnp.float32)
        # Whole-tile activations: 2 EUP calls per step instead of 4 partials.
        sig = jax.nn.sigmoid(g_t)              # (B, 4H)
        th = jnp.tanh(g_t)                     # (B, 4H)
        i_g = sig[:, 0 * H:1 * H]
        f_g = sig[:, 1 * H:2 * H]
        g_g = th[:, 2 * H:3 * H]
        o_g = sig[:, 3 * H:4 * H]
        c = f_g * c + i_g * g_g
        h = o_g * jnp.tanh(c)

    # linear1 applied to h_n
    out_ref[...] = (jnp.dot(h, w_lin_t_ref[...],
                            preferred_element_type=jnp.float32)
                    + b_lin_ref[...])          # (B, 7)


def sequence_forward(x, params):
    """x: (seq, batch, 5) float32 -> (1, batch, 7) float32 (matches PyTorch)."""
    S, B, I = x.shape
    assert I == INPUT_SIZE
    H = HIDDEN

    # Wrapper-side glue (free layout plumbing): pre-transpose weights so the
    # kernel does plain (M,K)x(K,N) matmuls, fuse the two LSTM biases, and make
    # biases 2-D lane-major.
    w_ih_t = params["w_ih"].T                                  # (I, 4H)
    w_hh_t = params["w_hh"].T                                  # (H, 4H)
    b = (params["b_ih"] + params["b_hh"]).reshape(1, 4 * H)    # (1, 4H)
    w_lin_t = params["w_lin"].T                                # (H, 7)
    b_lin = params["b_lin"].reshape(1, LIN_OUT)                # (1, 7)

    # Advisory cost hint for XLA's scheduler around the custom call.
    flops = int(2 * S * B * I * 4 * H            # x @ w_ih
                + 2 * S * B * H * 4 * H          # h @ w_hh (per step)
                + 2 * B * H * LIN_OUT)           # h_n @ w_lin
    transcendentals = int(S * B * (2 * 4 * H + H))   # sigmoid+tanh tiles, tanh(c)
    bytes_accessed = int(4 * (x.size + w_ih_t.size + w_hh_t.size + b.size
                              + w_lin_t.size + b_lin.size + B * LIN_OUT))

    vmem = pl.BlockSpec(memory_space=pltpu.MemorySpace.VMEM)
    out2d = pl.pallas_call(
        _lstm_linear_kernel,
        out_shape=jax.ShapeDtypeStruct((B, LIN_OUT), jnp.float32),
        in_specs=[vmem] * 6,
        out_specs=vmem,
        cost_estimate=pl.CostEstimate(flops=flops,
                                      transcendentals=transcendentals,
                                      bytes_accessed=bytes_accessed),
    )(x, w_ih_t, w_hh_t, b, w_lin_t, b_lin)
    return out2d[None, :, :]                   # (num_layers=1, B, 7)


def _reference(x, params):
    """Pure-JAX reference mirroring PyTorch semantics, for validation."""
    S, B, _ = x.shape
    H = HIDDEN
    w_ih, w_hh = params["w_ih"], params["w_hh"]
    b = params["b_ih"] + params["b_hh"]
    h = jnp.zeros((B, H), jnp.float32)
    c = jnp.zeros((B, H), jnp.float32)
    for t in range(S):
        g = x[t] @ w_ih.T + h @ w_hh.T + b
        i = jax.nn.sigmoid(g[:, :H])
        f = jax.nn.sigmoid(g[:, H:2 * H])
        gg = jnp.tanh(g[:, 2 * H:3 * H])
        o = jax.nn.sigmoid(g[:, 3 * H:])
        c = f * c + i * gg
        h = o * jnp.tanh(c)
    return (h @ params["w_lin"].T + params["b_lin"])[None]


def init_params(key):
    """Deterministic init; same uniform(-1/sqrt(H), 1/sqrt(H)) scheme as PyTorch."""
    H = HIDDEN
    k = 1.0 / jnp.sqrt(jnp.float32(H))
    ks = jax.random.split(key, 6)
    u = lambda kk, shape: jax.random.uniform(kk, shape, jnp.float32, -k, k)
    return {
        "w_ih": u(ks[0], (4 * H, INPUT_SIZE)),   # weight_ih_l0
        "w_hh": u(ks[1], (4 * H, H)),            # weight_hh_l0
        "b_ih": u(ks[2], (4 * H,)),              # bias_ih_l0
        "b_hh": u(ks[3], (4 * H,)),              # bias_hh_l0
        "w_lin": u(ks[4], (LIN_OUT, LIN_IN)),    # linear1.weight
        "b_lin": u(ks[5], (LIN_OUT,)),           # linear1.bias
    }


if __name__ == "__main__":
    key = jax.random.PRNGKey(0)
    k_p, k_x = jax.random.split(key)
    params = init_params(k_p)

    SEQ, BATCH = 8, 2
    x = jax.random.normal(k_x, (SEQ, BATCH, INPUT_SIZE), jnp.float32)

    out = sequence_forward(x, params)
    out = jax.block_until_ready(out)

    ref = _reference(x, params)
    assert out.shape == (NUM_LAYERS, BATCH, LIN_OUT)
    assert jnp.allclose(out, ref, atol=1e-5, rtol=1e-5), "mismatch vs reference"
    print("KERNEL_OK")
</pallas_src>

<mosaic_0001>
module attributes {stable_mosaic.version = 11 : i64} {
  func.func @_lstm_linear_kernel(%arg0: memref<8x2x5xf32, #tpu.memory_space<vmem>>, %arg1: memref<5x60xf32, #tpu.memory_space<vmem>>, %arg2: memref<15x60xf32, #tpu.memory_space<vmem>>, %arg3: memref<1x60xf32, #tpu.memory_space<vmem>>, %arg4: memref<15x7xf32, #tpu.memory_space<vmem>>, %arg5: memref<1x7xf32, #tpu.memory_space<vmem>>, %arg6: memref<2x7xf32, #tpu.memory_space<vmem>>) attributes {dimension_semantics = [], scalar_prefetch = 0 : i64, scratch_operands = 0 : i64, tpu.core_type = #tpu.core_type<tc>} {
    %c0 = arith.constant 0 : index
    %c0_0 = arith.constant 0 : index
    %c0_1 = arith.constant 0 : index
    %0 = vector.load %arg0[%c0, %c0_0, %c0_1] : memref<8x2x5xf32, #tpu.memory_space<vmem>>, vector<8x2x5xf32>
    %c0_2 = arith.constant 0 : index
    %c0_3 = arith.constant 0 : index
    %1 = vector.load %arg1[%c0_2, %c0_3] : memref<5x60xf32, #tpu.memory_space<vmem>>, vector<5x60xf32>
    %cst = arith.constant dense<0.000000e+00> : vector<8x2x60xf32>
    %2 = tpu.matmul %0, %1, %cst {dimension_numbers = #tpu.dot_dimension_numbers<[2], [0], [0, 1], [1], [0, 0, 0, 1, 1, 1], [], []>} : vector<8x2x5xf32>, vector<5x60xf32>, vector<8x2x60xf32> -> vector<8x2x60xf32>
    %c0_4 = arith.constant 0 : index
    %c0_5 = arith.constant 0 : index
    %3 = vector.load %arg3[%c0_4, %c0_5] : memref<1x60xf32, #tpu.memory_space<vmem>>, vector<1x60xf32>
    %4 = vector.shape_cast %3 : vector<1x60xf32> to vector<1x1x60xf32>
    %5 = vector.broadcast %4 : vector<1x1x60xf32> to vector<8x2x60xf32>
    %6 = arith.addf %2, %5 : vector<8x2x60xf32>
    %c0_6 = arith.constant 0 : index
    %c0_7 = arith.constant 0 : index
    %7 = vector.load %arg2[%c0_6, %c0_7] : memref<15x60xf32, #tpu.memory_space<vmem>>, vector<15x60xf32>
    %cst_8 = arith.constant 0.000000e+00 : f32
    %8 = vector.broadcast %cst_8 : f32 to vector<2x15xf32>
    %cst_9 = arith.constant 0.000000e+00 : f32
    %9 = vector.broadcast %cst_9 : f32 to vector<2x15xf32>
    %10 = vector.extract_strided_slice %6 {offsets = [0, 0, 0], sizes = [1, 2, 60], strides = [1, 1, 1]} : vector<8x2x60xf32> to vector<1x2x60xf32>
    %11 = vector.shape_cast %10 : vector<1x2x60xf32> to vector<2x60xf32>
    %cst_10 = arith.constant dense<0.000000e+00> : vector<2x60xf32>
    %12 = tpu.matmul %8, %7, %cst_10 {dimension_numbers = #tpu.dot_dimension_numbers<[1], [0], [0], [1], [0, 0, 1, 1], [], []>} : vector<2x15xf32>, vector<15x60xf32>, vector<2x60xf32> -> vector<2x60xf32>
    %13 = arith.addf %11, %12 : vector<2x60xf32>
    %14 = arith.negf %13 : vector<2x60xf32>
    %15 = math.exp %14 : vector<2x60xf32>
    %cst_11 = arith.constant 1.000000e+00 : f32
    %16 = vector.broadcast %cst_11 : f32 to vector<2x60xf32>
    %17 = arith.addf %16, %15 : vector<2x60xf32>
    %18 = arith.divf %16, %17 : vector<2x60xf32>
    %19 = math.tanh %13 : vector<2x60xf32>
    %20 = vector.extract_strided_slice %18 {offsets = [0, 0], sizes = [2, 15], strides = [1, 1]} : vector<2x60xf32> to vector<2x15xf32>
    %21 = vector.extract_strided_slice %18 {offsets = [0, 15], sizes = [2, 15], strides = [1, 1]} : vector<2x60xf32> to vector<2x15xf32>
    %22 = vector.extract_strided_slice %19 {offsets = [0, 30], sizes = [2, 15], strides = [1, 1]} : vector<2x60xf32> to vector<2x15xf32>
    %23 = vector.extract_strided_slice %18 {offsets = [0, 45], sizes = [2, 15], strides = [1, 1]} : vector<2x60xf32> to vector<2x15xf32>
    %24 = arith.mulf %21, %9 : vector<2x15xf32>
    %25 = arith.mulf %20, %22 : vector<2x15xf32>
    %26 = arith.addf %24, %25 : vector<2x15xf32>
    %27 = math.tanh %26 : vector<2x15xf32>
    %28 = arith.mulf %23, %27 : vector<2x15xf32>
    %29 = vector.extract_strided_slice %6 {offsets = [1, 0, 0], sizes = [1, 2, 60], strides = [1, 1, 1]} : vector<8x2x60xf32> to vector<1x2x60xf32>
    %30 = vector.shape_cast %29 : vector<1x2x60xf32> to vector<2x60xf32>
    %cst_12 = arith.constant dense<0.000000e+00> : vector<2x60xf32>
    %31 = tpu.matmul %28, %7, %cst_12 {dimension_numbers = #tpu.dot_dimension_numbers<[1], [0], [0], [1], [0, 0, 1, 1], [], []>} : vector<2x15xf32>, vector<15x60xf32>, vector<2x60xf32> -> vector<2x60xf32>
    %32 = arith.addf %30, %31 : vector<2x60xf32>
    %33 = arith.negf %32 : vector<2x60xf32>
    %34 = math.exp %33 : vector<2x60xf32>
    %cst_13 = arith.constant 1.000000e+00 : f32
    %35 = vector.broadcast %cst_13 : f32 to vector<2x60xf32>
    %36 = arith.addf %35, %34 : vector<2x60xf32>
    %37 = arith.divf %35, %36 : vector<2x60xf32>
    %38 = math.tanh %32 : vector<2x60xf32>
    %39 = vector.extract_strided_slice %37 {offsets = [0, 0], sizes = [2, 15], strides = [1, 1]} : vector<2x60xf32> to vector<2x15xf32>
    %40 = vector.extract_strided_slice %37 {offsets = [0, 15], sizes = [2, 15], strides = [1, 1]} : vector<2x60xf32> to vector<2x15xf32>
    %41 = vector.extract_strided_slice %38 {offsets = [0, 30], sizes = [2, 15], strides = [1, 1]} : vector<2x60xf32> to vector<2x15xf32>
    %42 = vector.extract_strided_slice %37 {offsets = [0, 45], sizes = [2, 15], strides = [1, 1]} : vector<2x60xf32> to vector<2x15xf32>
    %43 = arith.mulf %40, %26 : vector<2x15xf32>
    %44 = arith.mulf %39, %41 : vector<2x15xf32>
    %45 = arith.addf %43, %44 : vector<2x15xf32>
    %46 = math.tanh %45 : vector<2x15xf32>
    %47 = arith.mulf %42, %46 : vector<2x15xf32>
    %48 = vector.extract_strided_slice %6 {offsets = [2, 0, 0], sizes = [1, 2, 60], strides = [1, 1, 1]} : vector<8x2x60xf32> to vector<1x2x60xf32>
    %49 = vector.shape_cast %48 : vector<1x2x60xf32> to vector<2x60xf32>
    %cst_14 = arith.constant dense<0.000000e+00> : vector<2x60xf32>
    %50 = tpu.matmul %47, %7, %cst_14 {dimension_numbers = #tpu.dot_dimension_numbers<[1], [0], [0], [1], [0, 0, 1, 1], [], []>} : vector<2x15xf32>, vector<15x60xf32>, vector<2x60xf32> -> vector<2x60xf32>
    %51 = arith.addf %49, %50 : vector<2x60xf32>
    %52 = arith.negf %51 : vector<2x60xf32>
    %53 = math.exp %52 : vector<2x60xf32>
    %cst_15 = arith.constant 1.000000e+00 : f32
    %54 = vector.broadcast %cst_15 : f32 to vector<2x60xf32>
    %55 = arith.addf %54, %53 : vector<2x60xf32>
    %56 = arith.divf %54, %55 : vector<2x60xf32>
    %57 = math.tanh %51 : vector<2x60xf32>
    %58 = vector.extract_strided_slice %56 {offsets = [0, 0], sizes = [2, 15], strides = [1, 1]} : vector<2x60xf32> to vector<2x15xf32>
    %59 = vector.extract_strided_slice %56 {offsets = [0, 15], sizes = [2, 15], strides = [1, 1]} : vector<2x60xf32> to vector<2x15xf32>
    %60 = vector.extract_strided_slice %57 {offsets = [0, 30], sizes = [2, 15], strides = [1, 1]} : vector<2x60xf32> to vector<2x15xf32>
    %61 = vector.extract_strided_slice %56 {offsets = [0, 45], sizes = [2, 15], strides = [1, 1]} : vector<2x60xf32> to vector<2x15xf32>
    %62 = arith.mulf %59, %45 : vector<2x15xf32>
    %63 = arith.mulf %58, %60 : vector<2x15xf32>
    %64 = arith.addf %62, %63 : vector<2x15xf32>
    %65 = math.tanh %64 : vector<2x15xf32>
    %66 = arith.mulf %61, %65 : vector<2x15xf32>
    %67 = vector.extract_strided_slice %6 {offsets = [3, 0, 0], sizes = [1, 2, 60], strides = [1, 1, 1]} : vector<8x2x60xf32> to vector<1x2x60xf32>
    %68 = vector.shape_cast %67 : vector<1x2x60xf32> to vector<2x60xf32>
    %cst_16 = arith.constant dense<0.000000e+00> : vector<2x60xf32>
    %69 = tpu.matmul %66, %7, %cst_16 {dimension_numbers = #tpu.dot_dimension_numbers<[1], [0], [0], [1], [0, 0, 1, 1], [], []>} : vector<2x15xf32>, vector<15x60xf32>, vector<2x60xf32> -> vector<2x60xf32>
    %70 = arith.addf %68, %69 : vector<2x60xf32>
    %71 = arith.negf %70 : vector<2x60xf32>
    %72 = math.exp %71 : vector<2x60xf32>
    %cst_17 = arith.constant 1.000000e+00 : f32
    %73 = vector.broadcast %cst_17 : f32 to vector<2x60xf32>
    %74 = arith.addf %73, %72 : vector<2x60xf32>
    %75 = arith.divf %73, %74 : vector<2x60xf32>
    %76 = math.tanh %70 : vector<2x60xf32>
    %77 = vector.extract_strided_slice %75 {offsets = [0, 0], sizes = [2, 15], strides = [1, 1]} : vector<2x60xf32> to vector<2x15xf32>
    %78 = vector.extract_strided_slice %75 {offsets = [0, 15], sizes = [2, 15], strides = [1, 1]} : vector<2x60xf32> to vector<2x15xf32>
    %79 = vector.extract_strided_slice %76 {offsets = [0, 30], sizes = [2, 15], strides = [1, 1]} : vector<2x60xf32> to vector<2x15xf32>
    %80 = vector.extract_strided_slice %75 {offsets = [0, 45], sizes = [2, 15], strides = [1, 1]} : vector<2x60xf32> to vector<2x15xf32>
    %81 = arith.mulf %78, %64 : vector<2x15xf32>
    %82 = arith.mulf %77, %79 : vector<2x15xf32>
    %83 = arith.addf %81, %82 : vector<2x15xf32>
    %84 = math.tanh %83 : vector<2x15xf32>
    %85 = arith.mulf %80, %84 : vector<2x15xf32>
    %86 = vector.extract_strided_slice %6 {offsets = [4, 0, 0], sizes = [1, 2, 60], strides = [1, 1, 1]} : vector<8x2x60xf32> to vector<1x2x60xf32>
    %87 = vector.shape_cast %86 : vector<1x2x60xf32> to vector<2x60xf32>
    %cst_18 = arith.constant dense<0.000000e+00> : vector<2x60xf32>
    %88 = tpu.matmul %85, %7, %cst_18 {dimension_numbers = #tpu.dot_dimension_numbers<[1], [0], [0], [1], [0, 0, 1, 1], [], []>} : vector<2x15xf32>, vector<15x60xf32>, vector<2x60xf32> -> vector<2x60xf32>
    %89 = arith.addf %87, %88 : vector<2x60xf32>
    %90 = arith.negf %89 : vector<2x60xf32>
    %91 = math.exp %90 : vector<2x60xf32>
    %cst_19 = arith.constant 1.000000e+00 : f32
    %92 = vector.broadcast %cst_19 : f32 to vector<2x60xf32>
    %93 = arith.addf %92, %91 : vector<2x60xf32>
    %94 = arith.divf %92, %93 : vector<2x60xf32>
    %95 = math.tanh %89 : vector<2x60xf32>
    %96 = vector.extract_strided_slice %94 {offsets = [0, 0], sizes = [2, 15], strides = [1, 1]} : vector<2x60xf32> to vector<2x15xf32>
    %97 = vector.extract_strided_slice %94 {offsets = [0, 15], sizes = [2, 15], strides = [1, 1]} : vector<2x60xf32> to vector<2x15xf32>
    %98 = vector.extract_strided_slice %95 {offsets = [0, 30], sizes = [2, 15], strides = [1, 1]} : vector<2x60xf32> to vector<2x15xf32>
    %99 = vector.extract_strided_slice %94 {offsets = [0, 45], sizes = [2, 15], strides = [1, 1]} : vector<2x60xf32> to vector<2x15xf32>
    %100 = arith.mulf %97, %83 : vector<2x15xf32>
    %101 = arith.mulf %96, %98 : vector<2x15xf32>
    %102 = arith.addf %100, %101 : vector<2x15xf32>
    %103 = math.tanh %102 : vector<2x15xf32>
    %104 = arith.mulf %99, %103 : vector<2x15xf32>
    %105 = vector.extract_strided_slice %6 {offsets = [5, 0, 0], sizes = [1, 2, 60], strides = [1, 1, 1]} : vector<8x2x60xf32> to vector<1x2x60xf32>
    %106 = vector.shape_cast %105 : vector<1x2x60xf32> to vector<2x60xf32>
    %cst_20 = arith.constant dense<0.000000e+00> : vector<2x60xf32>
    %107 = tpu.matmul %104, %7, %cst_20 {dimension_numbers = #tpu.dot_dimension_numbers<[1], [0], [0], [1], [0, 0, 1, 1], [], []>} : vector<2x15xf32>, vector<15x60xf32>, vector<2x60xf32> -> vector<2x60xf32>
    %108 = arith.addf %106, %107 : vector<2x60xf32>
    %109 = arith.negf %108 : vector<2x60xf32>
    %110 = math.exp %109 : vector<2x60xf32>
    %cst_21 = arith.constant 1.000000e+00 : f32
    %111 = vector.broadcast %cst_21 : f32 to vector<2x60xf32>
    %112 = arith.addf %111, %110 : vector<2x60xf32>
    %113 = arith.divf %111, %112 : vector<2x60xf32>
    %114 = math.tanh %108 : vector<2x60xf32>
    %115 = vector.extract_strided_slice %113 {offsets = [0, 0], sizes = [2, 15], strides = [1, 1]} : vector<2x60xf32> to vector<2x15xf32>
    %116 = vector.extract_strided_slice %113 {offsets = [0, 15], sizes = [2, 15], strides = [1, 1]} : vector<2x60xf32> to vector<2x15xf32>
    %117 = vector.extract_strided_slice %114 {offsets = [0, 30], sizes = [2, 15], strides = [1, 1]} : vector<2x60xf32> to vector<2x15xf32>
    %118 = vector.extract_strided_slice %113 {offsets = [0, 45], sizes = [2, 15], strides = [1, 1]} : vector<2x60xf32> to vector<2x15xf32>
    %119 = arith.mulf %116, %102 : vector<2x15xf32>
    %120 = arith.mulf %115, %117 : vector<2x15xf32>
    %121 = arith.addf %119, %120 : vector<2x15xf32>
    %122 = math.tanh %121 : vector<2x15xf32>
    %123 = arith.mulf %118, %122 : vector<2x15xf32>
    %124 = vector.extract_strided_slice %6 {offsets = [6, 0, 0], sizes = [1, 2, 60], strides = [1, 1, 1]} : vector<8x2x60xf32> to vector<1x2x60xf32>
    %125 = vector.shape_cast %124 : vector<1x2x60xf32> to vector<2x60xf32>
    %cst_22 = arith.constant dense<0.000000e+00> : vector<2x60xf32>
    %126 = tpu.matmul %123, %7, %cst_22 {dimension_numbers = #tpu.dot_dimension_numbers<[1], [0], [0], [1], [0, 0, 1, 1], [], []>} : vector<2x15xf32>, vector<15x60xf32>, vector<2x60xf32> -> vector<2x60xf32>
    %127 = arith.addf %125, %126 : vector<2x60xf32>
    %128 = arith.negf %127 : vector<2x60xf32>
    %129 = math.exp %128 : vector<2x60xf32>
    %cst_23 = arith.constant 1.000000e+00 : f32
    %130 = vector.broadcast %cst_23 : f32 to vector<2x60xf32>
    %131 = arith.addf %130, %129 : vector<2x60xf32>
    %132 = arith.divf %130, %131 : vector<2x60xf32>
    %133 = math.tanh %127 : vector<2x60xf32>
    %134 = vector.extract_strided_slice %132 {offsets = [0, 0], sizes = [2, 15], strides = [1, 1]} : vector<2x60xf32> to vector<2x15xf32>
    %135 = vector.extract_strided_slice %132 {offsets = [0, 15], sizes = [2, 15], strides = [1, 1]} : vector<2x60xf32> to vector<2x15xf32>
    %136 = vector.extract_strided_slice %133 {offsets = [0, 30], sizes = [2, 15], strides = [1, 1]} : vector<2x60xf32> to vector<2x15xf32>
    %137 = vector.extract_strided_slice %132 {offsets = [0, 45], sizes = [2, 15], strides = [1, 1]} : vector<2x60xf32> to vector<2x15xf32>
    %138 = arith.mulf %135, %121 : vector<2x15xf32>
    %139 = arith.mulf %134, %136 : vector<2x15xf32>
    %140 = arith.addf %138, %139 : vector<2x15xf32>
    %141 = math.tanh %140 : vector<2x15xf32>
    %142 = arith.mulf %137, %141 : vector<2x15xf32>
    %143 = vector.extract_strided_slice %6 {offsets = [7, 0, 0], sizes = [1, 2, 60], strides = [1, 1, 1]} : vector<8x2x60xf32> to vector<1x2x60xf32>
    %144 = vector.shape_cast %143 : vector<1x2x60xf32> to vector<2x60xf32>
    %cst_24 = arith.constant dense<0.000000e+00> : vector<2x60xf32>
    %145 = tpu.matmul %142, %7, %cst_24 {dimension_numbers = #tpu.dot_dimension_numbers<[1], [0], [0], [1], [0, 0, 1, 1], [], []>} : vector<2x15xf32>, vector<15x60xf32>, vector<2x60xf32> -> vector<2x60xf32>
    %146 = arith.addf %144, %145 : vector<2x60xf32>
    %147 = arith.negf %146 : vector<2x60xf32>
    %148 = math.exp %147 : vector<2x60xf32>
    %cst_25 = arith.constant 1.000000e+00 : f32
    %149 = vector.broadcast %cst_25 : f32 to vector<2x60xf32>
    %150 = arith.addf %149, %148 : vector<2x60xf32>
    %151 = arith.divf %149, %150 : vector<2x60xf32>
    %152 = math.tanh %146 : vector<2x60xf32>
    %153 = vector.extract_strided_slice %151 {offsets = [0, 0], sizes = [2, 15], strides = [1, 1]} : vector<2x60xf32> to vector<2x15xf32>
    %154 = vector.extract_strided_slice %151 {offsets = [0, 15], sizes = [2, 15], strides = [1, 1]} : vector<2x60xf32> to vector<2x15xf32>
    %155 = vector.extract_strided_slice %152 {offsets = [0, 30], sizes = [2, 15], strides = [1, 1]} : vector<2x60xf32> to vector<2x15xf32>
    %156 = vector.extract_strided_slice %151 {offsets = [0, 45], sizes = [2, 15], strides = [1, 1]} : vector<2x60xf32> to vector<2x15xf32>
    %157 = arith.mulf %154, %140 : vector<2x15xf32>
    %158 = arith.mulf %153, %155 : vector<2x15xf32>
    %159 = arith.addf %157, %158 : vector<2x15xf32>
    %160 = math.tanh %159 : vector<2x15xf32>
    %161 = arith.mulf %156, %160 : vector<2x15xf32>
    %c0_26 = arith.constant 0 : index
    %c0_27 = arith.constant 0 : index
    %162 = vector.load %arg4[%c0_26, %c0_27] : memref<15x7xf32, #tpu.memory_space<vmem>>, vector<15x7xf32>
    %cst_28 = arith.constant dense<0.000000e+00> : vector<2x7xf32>
    %163 = tpu.matmul %161, %162, %cst_28 {dimension_numbers = #tpu.dot_dimension_numbers<[1], [0], [0], [1], [0, 0, 1, 1], [], []>} : vector<2x15xf32>, vector<15x7xf32>, vector<2x7xf32> -> vector<2x7xf32>
    %c0_29 = arith.constant 0 : index
    %c0_30 = arith.constant 0 : index
    %164 = vector.load %arg5[%c0_29, %c0_30] : memref<1x7xf32, #tpu.memory_space<vmem>>, vector<1x7xf32>
    %165 = vector.broadcast %164 : vector<1x7xf32> to vector<2x7xf32>
    %166 = arith.addf %163, %165 : vector<2x7xf32>
    %c0_31 = arith.constant 0 : index
    %c0_32 = arith.constant 0 : index
    %167 = vector.load %arg6[%c0_31, %c0_32] : memref<2x7xf32, #tpu.memory_space<vmem>>, vector<2x7xf32>
    tpu.vector_store %arg6[%c0_31, %c0_32], %166 {strides = array<i32>} : memref<2x7xf32, #tpu.memory_space<vmem>>, vector<2x7xf32>,
    return
  }
}

</mosaic_0001>

<bundles_post_ra>
// kernel: tpu_custom_call.1
= control target key start
LH: loop header
LB: loop body
LE: loop exit
PB: predicated region body
PF: predicated region fallthrough
CT: control target
= control target key end

     0   :  { %vm96_vm0 = vcmask 1044480   ;;  %v52_v2 = vlaneseq  ;;  %v1445_v11 = vmov 1983009808   ;;  %vm225_vm1 = vcmask 1046528   ;;  %s1676_s0 = inlined_call_operand.vmem [shape: f32[8,2,5], index: 0, kind: input, shape index: {}]   ;;  %s1677_s1 = inlined_call_operand.vmem [shape: f32[5,60], index: 1, kind: input, shape index: {}]   ;;  %s1678_s2 = inlined_call_operand.vmem [shape: f32[15,60], index: 2, kind: input, shape index: {}]   ;;  %s1679_s3 = inlined_call_operand.vmem [shape: f32[1,60], index: 3, kind: input, shape index: {}]   ;;  %s1680_s4 = inlined_call_operand.vmem [shape: f32[15,7], index: 4, kind: input, shape index: {}]   ;;  %s1681_s5 = inlined_call_operand.vmem [shape: f32[1,7], index: 5, kind: input, shape index: {}]   ;;  %s1682_s6 = inlined_call_operand.hbm [shape: f32[2,7], index: 6, kind: output, shape index: {}]  }
   0x1   :  { %v32_v0 = vld [vmem:[%s1677_s1] sm:$0x1f]  ;;  %v27_v5 = vld [vmem:[%s1676_s0 + $0x6] sm:$0x3]  ;;  %v28_v7 = vld [vmem:[%s1676_s0 + $0x8] sm:$0x3]  ;;  %v50_v12 = vunpack.c.l.s4 %v1445_v11 }
   0x2   :  { %v24_v1 = vld [vmem:[%s1676_s0] sm:$0x3]  ;;  %1243 = vmatprep.subr.msk.mxu0 %vm96_vm0, %v32_v0  ;;  %v25_v3 = vld [vmem:[%s1676_s0 + $0x2] sm:$0x3]  ;;  %v26_v4 = vld [vmem:[%s1676_s0 + $0x4] sm:$0x3] }
   0x3   :  { %1244 = vmatpush3.msk.msra.mxu0 %vm96_vm0, %v32_v0  ;;  %v53_v6 = vshrl.u32 %v52_v2, 7  ;;  %v219_v8 = vld [vmem:[%s1678_s2] sm:$0xff]  ;;  %v47_v9 = vcombine.low %v24_v1, %v25_v3  ;;  %v48_v10 = vcombine.low %v26_v4, %v27_v5  ;;  %v29_v13 = vld [vmem:[%s1676_s0 + $0xa] sm:$0x3]  ;;  %v30_v14 = vld [vmem:[%s1676_s0 + $0xc] sm:$0x3]  ;;  %v51_v19 = vunpack.c.0.s8 %v50_v12 }
   0x4   :  { %v31_v15 = vld [vmem:[%s1676_s0 + $0xe] sm:$0x3]  ;;  %v64_v16 = vcombine.low %v28_v7, %v29_v13  ;;  %v1446_v20 = vmov 0.0|0.0  }
   0x5   :  { %v65_v17 = vcombine.low %v30_v14, %v31_v15  ;;  %v220_v18 = vld [vmem:[%s1678_s2 + $0x8] sm:$0x7f]  ;;  %1311 = vmatprep.subr.bf16.mxu1 %v1446_v20  ;;  %1315 = vmatprep.subr.bf16.mxu0 %v1446_v20 }
   0x6   :  { %v1524_v21 = vpack.c.bf16 %v220_v18, %v219_v8 }
   0x7   :  { %11 = vsyncpa [#allocation3], 0  ;;  %vm1447_vm2 = vmmov 1   ;;  %v1531_v23 = vsub.s32 %v51_v19, %v53_v6  ;;  %vm1448_vm4 = vmmov 0   ;;  %v1449_v24 = vmov 0.0   ;;  %s1450_s18 = smov 98  }
   0x8   :  { %vm1527_vm3 = vmpackc.low %vm225_vm1, %vm1447_vm2  ;;  %1252 = vmatprep.mubr.msk.f32.mxu1 %vm1448_vm4, %v1449_v24  ;;  %vm91_vm5 = vcmask 39936   ;;  %v1183_v31 = vld [vmem:[%s1679_s3] ss:$0 sm:$0xff]  ;;  %s1451_s3 = smov 15   ;;  %s1452_s19 = smov 30   ;;  %vm221_vm6 = vcmask 121856  }
   0x9   :  { %1314 = vmatpush3.bf16.msk.msra.mxu1 %vm1527_vm3, %v1524_v21  ;;  %v55_v25 = vrot.slane %v47_v9, %v1531_v23  ;;  %v62_v26 = vrot.slane %v48_v10, %v1531_v23  ;;  %v72_v27 = vrot.slane %v64_v16, %v1531_v23  ;;  %v79_v28 = vrot.slane %v65_v17, %v1531_v23  ;;  %s1453_s20 = smov 83  }
   0xa   :  { %1319 = vmatprep.subr.bf16.mxu1 %v1446_v20  ;;  %v81_v32 = vcombine.low %v1183_v31, %v1183_v31  ;;  %vm1167_vm7 = vcmask 50176  }
   0xb   :  { %v63_v29 = vcombine.low %v55_v25, %v62_v26  ;;  %v80_v30 = vcombine.low %v72_v27, %v79_v28 }
   0xc   :  { %1253 = vmatmul.mubr.f32.vlgmr.msra.gmra.mrb[0].mxu1 %v1449_v24  ;;  %v88_v33 = vrot.slane %v81_v32, %v1531_v23 }
   0xd   :  { %1322 = vmatpush3.bf16.msk.msra.mxu1 %vm1527_vm3, %v1524_v21  ;;  %1266 = vmatprep.mubr.msk.f32.mxu1 %vm1448_vm4, %v1449_v24 }
   0xe   :  { %1327 = vmatprep.subr.bf16.mxu1 %v1446_v20  ;;  %1245 = vmatprep.mubr.msk.f32.mxu0 %vm91_vm5, %v63_v29  ;;  %v89_v35 = vcombine.low %v88_v33, %v88_v33 }
   0xf   :  { %1246 = vmatmul.mubr.msk.f32.vlgmr.msra.gmra.mrb[0].mxu0 %vm91_vm5, %v80_v30 }
  0x10   :  { %1318 = vmatpush3.bf16.msk.msra.mxu0 %vm1527_vm3, %v1524_v21  ;;  %1259 = vmatprep.mubr.msk.f32.mxu0 %vm1448_vm4, %v1449_v24 }
  0x11   :  { %1323 = vmatprep.subr.bf16.mxu0 %v1446_v20 }
  0xdf   :  { %v295_v34 = vpop.f32.mrb[0].mxu1 }
  0xe0   :  { %v1254_v36 = vpop.f32.mrb[1].mxu1 }
  0xe2   :  { %v1247_v37 = vpop.f32.mrb[0].mxu0 }
  0xe3   :  { %v1560_v38 = vadd.f32 %v1247_v37, %v89_v35  ;;  %v166_v39 = vpop.f32.mrb[1].mxu0 }
  0xe4   :  { %v1562_v40 = vadd.f32 %v166_v39, %v89_v35 }
  0xe6   :  { %v184_v41 = vrot.slane %v1562_v40, %v1531_v23  ;;  %v177_v13 = vcombine.high %v1562_v40, %v1562_v40 }
  0xe8   :  { %v299_v42 = vadd.f32 %v295_v34, %v184_v41  ;;  %v192_v58 = vcombine.high %v184_v41, %v184_v41  ;;  %v191_v14 = vrot.slane %v177_v13, %v1531_v23 }
  0xea   :  { %1357 = vtanh.f32 %v299_v42  ;;  %v1188_v44 = vmul.f32 -1.442695, %v299_v42  ;;  %v193_v39 = vcombine.high %v191_v14, %v191_v14 }
  0xec   :  { %1359 = vpow2.f32 %v1188_v44 }
  0xf4   :  { %v1358_v43 = vpop.eup %1357 }
  0xf5   :  { %309 = vrot.lane.b32.xlu0 %v1358_v43, %s1450_s18 }
  0xf6   :  { %v1360_v45 = vpop.eup %1359 }
  0xf7   :  { %v303_v46 = vadd.f32 1.0, %v1360_v45 }
  0xf9   :  { %1361 = vrcp.f32 %v303_v46 }
 0x103   :  { %v1362_v47 = vpop.eup %1361 }
 0x104   :  { %v307_v50 = vmul.f32 0.0, %v1362_v47 }
 0x167   :  { %v310_v48 = vpop.permute.xlu0 %309 }
 0x168   :  { %v312_v49 = vmul.f32 %v1362_v47, %v310_v48 }
 0x16a   :  { %314 = vrot.lane.b32.xlu0 %v312_v49, %s1451_s3 }
 0x1dc   :  { %v315_v51 = vpop.permute.xlu0 %314 }
 0x1dd   :  { %v317_v52 = vadd.f32 %v315_v51, %v307_v50 }
 0x1df   :  { %1363 = vtanh.f32 %v317_v52 }
 0x1e9   :  { %v1364_v53 = vpop.eup %1363 }
 0x1ea   :  { %320 = vrot.lane.b32.xlu1 %v1364_v53, %s1452_s19 }
 0x25c   :  { %v321_v54 = vpop.permute.xlu1 %320 }
 0x25d   :  { %v323_v55 = vmul.f32 %v1362_v47, %v321_v54 }
 0x25f   :  { %v331_v56 = vrot.slane %v323_v55, %v1531_v23 }
 0x261   :  { %332 = vrot.lane.b32.xlu1 %v331_v56, %s1453_s20 }
 0x2d3   :  { %v333_v57 = vpop.permute.xlu1 %332 }
 0x2d4   :  { %1260 = vmatmul.mubr.msk.f32.vlgmr.msra.gmra.mrb[2].mxu0 %vm221_vm6, %v333_v57 }
 0x2d5   :  { %1326 = vmatpush3.bf16.msk.msra.mxu0 %vm1527_vm3, %v1524_v21  ;;  %1273 = vmatprep.mubr.msk.f32.mxu0 %vm1448_vm4, %v1449_v24 }
 0x2d6   :  { %1331 = vmatprep.subr.bf16.mxu0 %v1446_v20 }
 0x3a7   :  { %v402_v59 = vpop.f32.mrb[2].mxu0 }
 0x3a8   :  { %v406_v60 = vadd.f32 %v402_v59, %v192_v58  ;;  %v1261_v61 = vpop.f32.mrb[3].mxu0  ;;  %v201_v58 = vrot.slane %v1560_v38, %v1531_v23 }
 0x3aa   :  { %1365 = vtanh.f32 %v406_v60  ;;  %v1191_v63 = vmul.f32 -1.442695, %v406_v60 }
 0x3ac   :  { %1367 = vpow2.f32 %v1191_v63 }
 0x3b4   :  { %v1366_v62 = vpop.eup %1365 }
 0x3b5   :  { %416 = vrot.lane.b32.xlu0 %v1366_v62, %s1450_s18 }
 0x3b6   :  { %v1368_v0 = vpop.eup %1367 }
 0x3b7   :  { %v410_v1 = vadd.f32 1.0, %v1368_v0 }
 0x3b9   :  { %1369 = vrcp.f32 %v410_v1 }
 0x3c3   :  { %v1370_v2 = vpop.eup %1369 }
 0x3c4   :  { %v414_v5 = vmul.f32 %v1370_v2, %v317_v52 }
 0x427   :  { %v417_v3 = vpop.permute.xlu0 %416 }
 0x428   :  { %v419_v4 = vmul.f32 %v1370_v2, %v417_v3 }
 0x42a   :  { %421 = vrot.lane.b32.xlu1 %v419_v4, %s1451_s3 }
 0x49c   :  { %v422_v6 = vpop.permute.xlu1 %421 }
 0x49d   :  { %v424_v7 = vadd.f32 %v422_v6, %v414_v5 }
 0x49f   :  { %1371 = vtanh.f32 %v424_v7 }
 0x4a9   :  { %v1372_v8 = vpop.eup %1371 }
 0x4aa   :  { %427 = vrot.lane.b32.xlu0 %v1372_v8, %s1452_s19 }
 0x51c   :  { %v428_v9 = vpop.permute.xlu0 %427 }
 0x51d   :  { %v430_v10 = vmul.f32 %v1370_v2, %v428_v9 }
 0x51f   :  { %v438_v11 = vrot.slane %v430_v10, %v1531_v23 }
 0x521   :  { %439 = vrot.lane.b32.xlu1 %v438_v11, %s1453_s20 }
 0x593   :  { %v440_v12 = vpop.permute.xlu1 %439 }
 0x594   :  { %1267 = vmatmul.mubr.msk.f32.vlgmr.msra.gmra.mrb[2].mxu1 %vm221_vm6, %v440_v12  ;;  %v209_v12 = vcombine.high %v201_v58, %v201_v58 }
 0x595   :  { %1330 = vmatpush3.bf16.msk.msra.mxu1 %vm1527_vm3, %v1524_v21  ;;  %1280 = vmatprep.mubr.msk.f32.mxu1 %vm1448_vm4, %v1449_v24 }
 0x596   :  { %1335 = vmatprep.subr.bf16.mxu1 %v1446_v20 }
 0x667   :  { %v509_v15 = vpop.f32.mrb[2].mxu1 }
 0x668   :  { %v513_v16 = vadd.f32 %v509_v15, %v191_v14  ;;  %v1268_v17 = vpop.f32.mrb[3].mxu1 }
 0x66a   :  { %1373 = vtanh.f32 %v513_v16  ;;  %v1194_v19 = vmul.f32 -1.442695, %v513_v16 }
 0x66c   :  { %1375 = vpow2.f32 %v1194_v19 }
 0x674   :  { %v1374_v18 = vpop.eup %1373 }
 0x675   :  { %523 = vrot.lane.b32.xlu0 %v1374_v18, %s1450_s18 }
 0x676   :  { %v1376_v25 = vpop.eup %1375 }
 0x677   :  { %v517_v26 = vadd.f32 1.0, %v1376_v25 }
 0x679   :  { %1377 = vrcp.f32 %v517_v26 }
 0x683   :  { %v1378_v27 = vpop.eup %1377 }
 0x684   :  { %v521_v30 = vmul.f32 %v1378_v27, %v424_v7 }
 0x6e7   :  { %v524_v28 = vpop.permute.xlu0 %523 }
 0x6e8   :  { %v526_v29 = vmul.f32 %v1378_v27, %v524_v28 }
 0x6ea   :  { %528 = vrot.lane.b32.xlu1 %v526_v29, %s1451_s3 }
 0x75c   :  { %v529_v31 = vpop.permute.xlu1 %528 }
 0x75d   :  { %v531_v32 = vadd.f32 %v529_v31, %v521_v30 }
 0x75f   :  { %1379 = vtanh.f32 %v531_v32 }
 0x769   :  { %v1380_v33 = vpop.eup %1379 }
 0x76a   :  { %534 = vrot.lane.b32.xlu0 %v1380_v33, %s1452_s19 }
 0x7dc   :  { %v535_v34 = vpop.permute.xlu0 %534 }
 0x7dd   :  { %v537_v35 = vmul.f32 %v1378_v27, %v535_v34 }
 0x7df   :  { %v545_v36 = vrot.slane %v537_v35, %v1531_v23  ;;  %v194_v35 = vcombine.high %v1560_v38, %v1560_v38 }
 0x7e1   :  { %546 = vrot.lane.b32.xlu1 %v545_v36, %s1453_s20  ;;  %v208_v36 = vrot.slane %v194_v35, %v1531_v23 }
 0x853   :  { %v547_v37 = vpop.permute.xlu1 %546 }
 0x854   :  { %1274 = vmatmul.mubr.msk.f32.vlgmr.msra.gmra.mrb[4].mxu0 %vm221_vm6, %v547_v37 }
 0x855   :  { %1334 = vmatpush3.bf16.msk.msra.mxu0 %vm1527_vm3, %v1524_v21  ;;  %1287 = vmatprep.mubr.msk.f32.mxu0 %vm1448_vm4, %v1449_v24 }
 0x856   :  { %1339 = vmatprep.subr.bf16.mxu0 %v1446_v20 }
 0x927   :  { %v616_v40 = vpop.f32.mrb[4].mxu0 }
 0x928   :  { %v620_v41 = vadd.f32 %v616_v40, %v193_v39  ;;  %v1275_v42 = vpop.f32.mrb[5].mxu0 }
 0x92a   :  { %1381 = vtanh.f32 %v620_v41  ;;  %v1197_v44 = vmul.f32 -1.442695, %v620_v41 }
 0x92c   :  { %1383 = vpow2.f32 %v1197_v44 }
 0x934   :  { %v1382_v43 = vpop.eup %1381 }
 0x935   :  { %630 = vrot.lane.b32.xlu0 %v1382_v43, %s1450_s18 }
 0x936   :  { %v1384_v45 = vpop.eup %1383 }
 0x937   :  { %v624_v46 = vadd.f32 1.0, %v1384_v45 }
 0x939   :  { %1385 = vrcp.f32 %v624_v46 }
 0x943   :  { %v1386_v47 = vpop.eup %1385 }
 0x944   :  { %v628_v50 = vmul.f32 %v1386_v47, %v531_v32 }
 0x9a7   :  { %v631_v48 = vpop.permute.xlu0 %630 }
 0x9a8   :  { %v633_v49 = vmul.f32 %v1386_v47, %v631_v48 }
 0x9aa   :  { %635 = vrot.lane.b32.xlu1 %v633_v49, %s1451_s3 }
 0xa1c   :  { %v636_v51 = vpop.permute.xlu1 %635 }
 0xa1d   :  { %v638_v52 = vadd.f32 %v636_v51, %v628_v50 }
 0xa1f   :  { %1387 = vtanh.f32 %v638_v52 }
 0xa29   :  { %v1388_v53 = vpop.eup %1387 }
 0xa2a   :  { %641 = vrot.lane.b32.xlu0 %v1388_v53, %s1452_s19 }
 0xa9c   :  { %v642_v54 = vpop.permute.xlu0 %641 }
 0xa9d   :  { %v644_v55 = vmul.f32 %v1386_v47, %v642_v54  ;;  %v210_v54 = vcombine.high %v208_v36, %v208_v36 }
 0xa9f   :  { %v652_v56 = vrot.slane %v644_v55, %v1531_v23 }
 0xaa1   :  { %653 = vrot.lane.b32.xlu1 %v652_v56, %s1453_s20 }
 0xb13   :  { %v654_v57 = vpop.permute.xlu1 %653 }
 0xb14   :  { %1281 = vmatmul.mubr.msk.f32.vlgmr.msra.gmra.mrb[4].mxu1 %vm221_vm6, %v654_v57 }
 0xb15   :  { %1338 = vmatpush3.bf16.msk.msra.mxu1 %vm1527_vm3, %v1524_v21  ;;  %1294 = vmatprep.mubr.msk.f32.mxu1 %vm1448_vm4, %v1449_v24 }
 0xb16   :  { %1343 = vmatprep.subr.bf16.mxu1 %v1446_v20 }
 0xbe7   :  { %v723_v59 = vpop.f32.mrb[4].mxu1 }
 0xbe8   :  { %v727_v60 = vadd.f32 %v723_v59, %v201_v58  ;;  %v1282_v61 = vpop.f32.mrb[5].mxu1 }
 0xbea   :  { %1389 = vtanh.f32 %v727_v60  ;;  %v1200_v63 = vmul.f32 -1.442695, %v727_v60 }
 0xbec   :  { %1391 = vpow2.f32 %v1200_v63 }
 0xbf4   :  { %v1390_v62 = vpop.eup %1389 }
 0xbf5   :  { %737 = vrot.lane.b32.xlu0 %v1390_v62, %s1450_s18 }
 0xbf6   :  { %v1392_v0 = vpop.eup %1391 }
 0xbf7   :  { %v731_v1 = vadd.f32 1.0, %v1392_v0 }
 0xbf9   :  { %1393 = vrcp.f32 %v731_v1 }
 0xc03   :  { %v1394_v2 = vpop.eup %1393 }
 0xc04   :  { %v735_v20 = vmul.f32 %v1394_v2, %v638_v52 }
 0xc67   :  { %v738_v3 = vpop.permute.xlu0 %737 }
 0xc68   :  { %v740_v4 = vmul.f32 %v1394_v2, %v738_v3 }
 0xc6a   :  { %742 = vrot.lane.b32.xlu1 %v740_v4, %s1451_s3  ;;  %v1073_v4 = vld [vmem:[%s1680_s4] sm:$0xff] }
 0xcdc   :  { %v743_v5 = vpop.permute.xlu1 %742 }
 0xcdd   :  { %v745_v6 = vadd.f32 %v743_v5, %v735_v20  ;;  %v1074_v20 = vld [vmem:[%s1680_s4 + $0x8] sm:$0x7f]  ;;  %s1454_s4 = smov [#allocation2]  }
 0xcde   :  { %v1344_v5 = vpack.c.bf16 %v1074_v20, %v1073_v4  ;;  %s1175_s27 = sshll.u32 %s1454_s4, 4  ;;  %s1176_s27 = int_to_ptr.vmem [resolvable:$true] %s1175_s27 }
 0xcdf   :  { %1395 = vtanh.f32 %v745_v6  ;;  %s1421_s28 = scalar_lea.vmem %s1176_s27, 32  ;;  %p1426_p1 = scmp.lt.s32.totalorder %s1176_s27, %s1176_s27 }
 0xce0   :  { %p1422_p0 = scmp.ne.s32.totalorder %s1176_s27, %s1421_s28  ;;  %p1427_p2 = scmp.lt.s32.totalorder %s1421_s28, %s1421_s28 }
 0xce2   :  { %p1428_p3 = por %p1427_p2, %p1426_p1 }
 0xce4   :  { %p1429_p4 = pnand %p1428_p3, %p1422_p0 }
 0xce9   :  { %v1396_v7 = vpop.eup %1395 }
 0xcea   :  { %748 = vrot.lane.b32.xlu0 %v1396_v7, %s1452_s19 }
 0xd5c   :  { %v749_v8 = vpop.permute.xlu0 %748 }
 0xd5d   :  { %v751_v9 = vmul.f32 %v1394_v2, %v749_v8 }
 0xd5f   :  { %v759_v10 = vrot.slane %v751_v9, %v1531_v23 }
 0xd61   :  { %760 = vrot.lane.b32.xlu1 %v759_v10, %s1453_s20 }
 0xdd3   :  { %v761_v11 = vpop.permute.xlu1 %760 }
 0xdd4   :  { %1288 = vmatmul.mubr.msk.f32.vlgmr.msra.gmra.mrb[6].mxu0 %vm221_vm6, %v761_v11  ;;  %v1210_v11 = vld [vmem:[%s1681_s5] ss:$0 sm:$0xff] }
 0xdd5   :  { %1342 = vmatpush3.bf16.msk.msra.mxu0 %vm1527_vm3, %v1524_v21  ;;  %1301 = vmatprep.mubr.msk.f32.mxu0 %vm1448_vm4, %v1449_v24 }
 0xea7   :  { %v830_v13 = vpop.f32.mrb[6].mxu0 }
 0xea8   :  { %v834_v14 = vadd.f32 %v830_v13, %v209_v12  ;;  %v1289_v15 = vpop.f32.mrb[7].mxu0 }
 0xeaa   :  { %1397 = vtanh.f32 %v834_v14  ;;  %v1203_v17 = vmul.f32 -1.442695, %v834_v14 }
 0xeac   :  { %1399 = vpow2.f32 %v1203_v17 }
 0xeb4   :  { %v1398_v16 = vpop.eup %1397 }
 0xeb5   :  { %844 = vrot.lane.b32.xlu0 %v1398_v16, %s1450_s18 }
 0xeb6   :  { %v1400_v18 = vpop.eup %1399 }
 0xeb7   :  { %v838_v19 = vadd.f32 1.0, %v1400_v18 }
 0xeb9   :  { %1401 = vrcp.f32 %v838_v19 }
 0xec3   :  { %v1402_v25 = vpop.eup %1401 }
 0xec4   :  { %v842_v21 = vmul.f32 %v1402_v25, %v745_v6 }
 0xf27   :  { %v845_v26 = vpop.permute.xlu0 %844 }
 0xf28   :  { %v847_v27 = vmul.f32 %v1402_v25, %v845_v26 }
 0xf2a   :  { %849 = vrot.lane.b32.xlu1 %v847_v27, %s1451_s3 }
 0xf9c   :  { %v850_v28 = vpop.permute.xlu1 %849 }
 0xf9d   :  { %v852_v29 = vadd.f32 %v850_v28, %v842_v21 }
 0xf9f   :  { %1403 = vtanh.f32 %v852_v29 }
 0xfa9   :  { %v1404_v30 = vpop.eup %1403 }
 0xfaa   :  { %855 = vrot.lane.b32.xlu0 %v1404_v30, %s1452_s19 }
0x101c   :  { %v856_v31 = vpop.permute.xlu0 %855 }
0x101d   :  { %v858_v32 = vmul.f32 %v1402_v25, %v856_v31 }
0x101f   :  { %v866_v33 = vrot.slane %v858_v32, %v1531_v23 }
0x1021   :  { %867 = vrot.lane.b32.xlu1 %v866_v33, %s1453_s20 }
0x1093   :  { %v868_v34 = vpop.permute.xlu1 %867 }
0x1094   :  { %1295 = vmatmul.mubr.msk.f32.vlgmr.msra.gmra.mrb[6].mxu1 %vm221_vm6, %v868_v34 }
0x1095   :  { %1308 = vmatprep.mubr.msk.f32.mxu1 %vm1448_vm4, %v1449_v24  ;;  %1346 = vmatpush3.bf16.msk.msra.mxu1 %vm1527_vm3, %v1344_v5 }
0x1167   :  { %v937_v37 = vpop.f32.mrb[6].mxu1 }
0x1168   :  { %v941_v39 = vadd.f32 %v937_v37, %v208_v36  ;;  %v1296_v40 = vpop.f32.mrb[7].mxu1 }
0x116a   :  { %1405 = vtanh.f32 %v941_v39  ;;  %v1206_v42 = vmul.f32 -1.442695, %v941_v39 }
0x116c   :  { %1407 = vpow2.f32 %v1206_v42 }
0x1174   :  { %v1406_v41 = vpop.eup %1405 }
0x1175   :  { %951 = vrot.lane.b32.xlu0 %v1406_v41, %s1450_s18 }
0x1176   :  { %v1408_v43 = vpop.eup %1407 }
0x1177   :  { %v945_v44 = vadd.f32 1.0, %v1408_v43 }
0x1179   :  { %1409 = vrcp.f32 %v945_v44 }
0x1183   :  { %v1410_v45 = vpop.eup %1409 }
0x1184   :  { %v949_v38 = vmul.f32 %v1410_v45, %v852_v29 }
0x11e7   :  { %v952_v46 = vpop.permute.xlu0 %951 }
0x11e8   :  { %v954_v24 = vmul.f32 %v1410_v45, %v952_v46 }
0x11ea   :  { %956 = vrot.lane.b32.xlu1 %v954_v24, %s1451_s3 }
0x125c   :  { %v957_v47 = vpop.permute.xlu1 %956 }
0x125d   :  { %v959_v48 = vadd.f32 %v957_v47, %v949_v38 }
0x125f   :  { %1411 = vtanh.f32 %v959_v48 }
0x1269   :  { %v1412_v49 = vpop.eup %1411 }
0x126a   :  { %962 = vrot.lane.b32.xlu0 %v1412_v49, %s1452_s19 }
0x12dc   :  { %v963_v50 = vpop.permute.xlu0 %962 }
0x12dd   :  { %v965_v51 = vmul.f32 %v1410_v45, %v963_v50 }
0x12df   :  { %v973_v52 = vrot.slane %v965_v51, %v1531_v23 }
0x12e1   :  { %974 = vrot.lane.b32.xlu1 %v973_v52, %s1453_s20 }
0x1353   :  { %v975_v53 = vpop.permute.xlu1 %974 }
0x1354   :  { %1302 = vmatmul.mubr.msk.f32.vlgmr.msra.gmra.mrb[8].mxu0 %vm221_vm6, %v975_v53 }
0x1427   :  { %v1044_v55 = vpop.f32.mrb[8].mxu0 }
0x1428   :  { %v1048_v56 = vadd.f32 %v1044_v55, %v210_v54  ;;  %v1303_v57 = vpop.f32.mrb[9].mxu0 }
0x142a   :  { %1413 = vtanh.f32 %v1048_v56  ;;  %v1209_v59 = vmul.f32 -1.442695, %v1048_v56 }
0x142c   :  { %1415 = vpow2.f32 %v1209_v59 }
0x1434   :  { %v1414_v58 = vpop.eup %1413 }
0x1435   :  { %1058 = vrot.lane.b32.xlu0 %v1414_v58, %s1450_s18 }
0x1436   :  { %v1416_v60 = vpop.eup %1415 }
0x1437   :  { %v1052_v61 = vadd.f32 1.0, %v1416_v60 }
0x1439   :  { %1417 = vrcp.f32 %v1052_v61 }
0x1443   :  { %v1418_v62 = vpop.eup %1417 }
0x1444   :  { %v1056_v1 = vmul.f32 %v1418_v62, %v959_v48 }
0x14a7   :  { %v1059_v63 = vpop.permute.xlu0 %1058 }
0x14a8   :  { %v1061_v0 = vmul.f32 %v1418_v62, %v1059_v63 }
0x14aa   :  { %1063 = vrot.lane.b32.xlu1 %v1061_v0, %s1451_s3 }
0x151c   :  { %v1064_v2 = vpop.permute.xlu1 %1063 }
0x151d   :  { %v1066_v3 = vadd.f32 %v1064_v2, %v1056_v1 }
0x151f   :  { %1419 = vtanh.f32 %v1066_v3 }
0x1529   :  { %v1420_v6 = vpop.eup %1419 }
0x152a   :  { %1069 = vrot.lane.b32.xlu0 %v1420_v6, %s1452_s19 }
0x159c   :  { %v1070_v7 = vpop.permute.xlu0 %1069 }
0x159d   :  { %v1072_v8 = vmul.f32 %v1418_v62, %v1070_v7 }
0x159f   :  { %v1089_v9 = vrot.slane %v1072_v8, %v1531_v23 }
0x15a1   :  { %1090 = vrot.lane.b32.xlu1 %v1089_v9, %s1453_s20 }
0x1613   :  { %v1091_v10 = vpop.permute.xlu1 %1090 }
0x1614   :  { %1309 = vmatmul.mubr.msk.f32.vlgmr.msra.gmra.mrb[8].mxu1 %vm221_vm6, %v1091_v10 }
0x16e7   :  { %v1163_v22 = vpop.f32.mrb[8].mxu1 }
0x16e8   :  { %v1164_v12 = vadd.f32 %v1210_v11, %v1163_v22  ;;  %v1310_v13 = vpop.f32.mrb[9].mxu1 }
0x16ea   :  { %1168 = vst.msk [vmem:[#allocation2] sm:$0x3] %vm1167_vm7, %v1164_v12 }
0x16eb   :  { %1432 = shalt.err (!%p1429_p4)
}
0x16ec   :  { %s1433_s1 = scalar_lea.hbm %s1682_s6, 32 }
0x16ed   :  { %p1434_p5 = scmp.ne.s32.totalorder %s1682_s6, %s1433_s1  ;;  %p1437_p6 = scmp.lt.u32.totalorder %s1433_s1, %s1682_s6 }
0x16ef   :  { %p1439_p7 = pnand %p1437_p6, %p1434_p5 }
0x16f1   :  { %1442 = shalt.err (!%p1439_p7)
}
0x16f2   :  { %1178 = dma.vmem_to_hbm [thread:$0]  %s1176_s27, 32, %s1682_s6, [#allocation3]  }
0x16f3   :  { %1443 = dma.done.wait [#allocation3], 32  }
0x16f4   :  { %1444 = vsyncadd [#allocation3], 4294967264 }
0x16f5   :  { %1182 = vsyncpa [#allocation3], 1 }

</bundles_post_ra>
